<compile_context>
chip_gen: v5e
topology: v5e:2x2
jax: 0.10.0
libtpu: 0.0.40
codegen_flags: <defaults>
</compile_context>

<pallas_src>
import functools
import math

import jax
import jax.numpy as jnp
from jax.experimental import pallas as pl
from jax.experimental.pallas import tpu as pltpu


def _round_up(x, m):
    return ((x + m - 1) // m) * m


def _lcm(a, b):
    return a * b // math.gcd(a, b)


# ---------------------------------------------------------------------------
# Tiled matmul (+ bias) kernel: rows of x are tiled, weight + bias stay resident.
# ---------------------------------------------------------------------------
def _matmul_bias_kernel(x_ref, w_ref, b_ref, o_ref):
    acc = jnp.dot(x_ref[...], w_ref[...], preferred_element_type=jnp.float32)
    acc = acc + b_ref[...].astype(jnp.float32)
    o_ref[...] = acc.astype(o_ref.dtype)


def _linear(x2d, w, b=None, *, block_m=128):
    m, k = x2d.shape
    n = w.shape[1]
    tm = min(block_m, _round_up(m, 8))
    mp = _round_up(m, tm)
    xp = jnp.pad(x2d, ((0, mp - m), (0, 0)))
    if b is None:
        b = jnp.zeros((1, n), dtype=x2d.dtype)
    b = jnp.asarray(b, dtype=x2d.dtype).reshape(1, n)
    out = pl.pallas_call(
        _matmul_bias_kernel,
        out_shape=jax.ShapeDtypeStruct((mp, n), x2d.dtype),
        grid=(mp // tm,),
        in_specs=[
            pl.BlockSpec((tm, k), lambda i: (i, 0)),
            pl.BlockSpec((k, n), lambda i: (0, 0)),
            pl.BlockSpec((1, n), lambda i: (0, 0)),
        ],
        out_specs=pl.BlockSpec((tm, n), lambda i: (i, 0)),
        compiler_params=pltpu.CompilerParams(dimension_semantics=("parallel",)),
    )(xp, w, b)
    return out[:m]


# ---------------------------------------------------------------------------
# Flash-attention core: causal mask + online softmax, accumulators in VMEM scratch.
# ---------------------------------------------------------------------------
def _flash_mha_kernel(q_ref, k_ref, v_ref, o_ref, m_sc, l_sc, acc_sc,
                      *, block_q, block_kv, scale):
    qi = pl.program_id(1)
    ki = pl.program_id(2)

    @pl.when(ki == 0)
    def _init():
        m_sc[...] = jnp.full_like(m_sc, -jnp.inf)
        l_sc[...] = jnp.zeros_like(l_sc)
        acc_sc[...] = jnp.zeros_like(acc_sc)

    # Skip kv tiles that lie entirely above the causal diagonal for this q tile.
    @pl.when(ki * block_kv <= qi * block_q + (block_q - 1))
    def _compute():
        q = q_ref[0] * scale                      # fold 1/sqrt(head_dim) into Q tile
        k = k_ref[0]
        # NT contraction straight on the MXU — no explicit K transpose (no XLU vxpose).
        s = jax.lax.dot_general(
            q, k, (((1,), (1,)), ((), ())),
            preferred_element_type=jnp.float32)   # (block_q, block_kv)

        row = qi * block_q + jax.lax.broadcasted_iota(
            jnp.int32, (block_q, block_kv), 0)
        col = ki * block_kv + jax.lax.broadcasted_iota(
            jnp.int32, (block_q, block_kv), 1)
        # Causal mask; padded key rows (>= real S) are also future keys for every
        # real query, so this masks them too.
        s = jnp.where(col <= row, s, -jnp.inf)

        m_prev = m_sc[...]
        m_new = jnp.maximum(m_prev, s.max(axis=-1, keepdims=True))
        alpha = jnp.exp(m_prev - m_new)
        p = jnp.exp(s - m_new)
        l_sc[...] = alpha * l_sc[...] + p.sum(axis=-1, keepdims=True)
        acc_sc[...] = alpha * acc_sc[...] + jnp.dot(
            p.astype(v_ref.dtype), v_ref[0], preferred_element_type=jnp.float32)
        m_sc[...] = m_new

    @pl.when(ki == pl.num_programs(2) - 1)
    def _finalize():
        inv_l = pl.reciprocal(l_sc[...], approx=True)   # EUP, keeps VALU free
        o_ref[0] = (acc_sc[...] * inv_l).astype(o_ref.dtype)


# ---------------------------------------------------------------------------
# Full module forward.
# ---------------------------------------------------------------------------
def multi_head_attention(x, w_q, w_k, w_v, w_o, b_o, *, num_heads,
                         block_q=128, block_kv=128):
    B, S, d_in = x.shape
    d_out = w_q.shape[1]
    assert d_out % num_heads == 0, "d_out must be divisible by num_heads"
    H = num_heads
    hd = d_out // H
    dp = _round_up(hd, 128)                     # lane-dense padded head dim

    # ---- fused, lane-dense QKV projection (one matmul instead of three) ----
    def _pad_heads(w):
        w = w.reshape(d_in, H, hd)
        w = jnp.pad(w, ((0, 0), (0, 0), (0, dp - hd)))
        return w.reshape(d_in, H * dp)

    w_qkv = jnp.concatenate(
        [_pad_heads(w_q), _pad_heads(w_k), _pad_heads(w_v)], axis=1)  # (d_in, 3*H*dp)
    qkv = _linear(x.reshape(B * S, d_in), w_qkv)                       # (B*S, 3*H*dp)

    # ---- tiling / sequence padding ----
    s8 = _round_up(S, 8)
    bq = min(block_q, s8)
    bkv = min(block_kv, s8)
    sp = _round_up(S, _lcm(bq, bkv))

    qkv = qkv.reshape(B, S, 3, H, dp)
    qkv = jnp.pad(qkv, ((0, 0), (0, sp - S), (0, 0), (0, 0), (0, 0)))
    qkv = jnp.transpose(qkv, (2, 0, 3, 1, 4))                          # (3, B, H, sp, dp)
    q = qkv[0].reshape(B * H, sp, dp)
    k = qkv[1].reshape(B * H, sp, dp)
    v = qkv[2].reshape(B * H, sp, dp)

    scale = 1.0 / math.sqrt(hd)   # torch: attn_scores / keys.shape[-1]**0.5 (head_dim)

    kernel = functools.partial(_flash_mha_kernel,
                               block_q=bq, block_kv=bkv, scale=scale)
    ctx = pl.pallas_call(
        kernel,
        out_shape=jax.ShapeDtypeStruct((B * H, sp, dp), x.dtype),
        grid=(B * H, sp // bq, sp // bkv),
        in_specs=[
            pl.BlockSpec((1, bq, dp), lambda b, qi, ki: (b, qi, 0)),
            pl.BlockSpec((1, bkv, dp), lambda b, qi, ki: (b, ki, 0)),
            pl.BlockSpec((1, bkv, dp), lambda b, qi, ki: (b, ki, 0)),
        ],
        out_specs=pl.BlockSpec((1, bq, dp), lambda b, qi, ki: (b, qi, 0)),
        scratch_shapes=[
            pltpu.VMEM((bq, 1), jnp.float32),    # running max
            pltpu.VMEM((bq, 1), jnp.float32),    # running denominator
            pltpu.VMEM((bq, dp), jnp.float32),   # f32 output accumulator
        ],
        compiler_params=pltpu.CompilerParams(
            dimension_semantics=("parallel", "parallel", "arbitrary")),
    )(q, k, v)

    # TODO(synk): nn.Dropout(p) on attn_weights — eval-mode identity (no RNG dropout).

    # ---- merge heads (drop seq/head padding) + output projection ----
    ctx = ctx.reshape(B, H, sp, dp)[:, :, :S, :hd]        # (B, H, S, hd)
    ctx = jnp.transpose(ctx, (0, 2, 1, 3)).reshape(B * S, d_out)
    out = _linear(ctx, w_o, b_o)                          # (B*S, d_out)
    return out.reshape(B, S, d_out)


# ---------------------------------------------------------------------------
# Pure-JAX reference (matches the PyTorch forward).
# ---------------------------------------------------------------------------
def multi_head_attention_ref(x, w_q, w_k, w_v, w_o, b_o, *, num_heads):
    B, S, _ = x.shape
    d_out = w_q.shape[1]
    hd = d_out // num_heads

    def split(w):
        return jnp.transpose((x @ w).reshape(B, S, num_heads, hd), (0, 2, 1, 3))

    q, k, v = split(w_q), split(w_k), split(w_v)
    s = jnp.einsum('bhqd,bhkd->bhqk', q, k) / math.sqrt(hd)
    causal = jnp.triu(jnp.ones((S, S), dtype=bool), k=1)
    s = jnp.where(causal[None, None], -jnp.inf, s)
    w = jax.nn.softmax(s, axis=-1)
    ctx = jnp.einsum('bhqk,bhkd->bhqd', w, v)
    ctx = jnp.transpose(ctx, (0, 2, 1, 3)).reshape(B, S, d_out)
    return ctx @ w_o + jnp.asarray(b_o).reshape(1, 1, d_out)


if __name__ == "__main__":
    # --- Config 1: spec-faithful shapes (batch of two copies of the 6x3 inputs) ---
    inputs = jnp.array(
        [[0.43, 0.15, 0.89],
         [0.55, 0.87, 0.66],
         [0.57, 0.85, 0.64],
         [0.22, 0.58, 0.33],
         [0.77, 0.25, 0.10],
         [0.05, 0.80, 0.55]], dtype=jnp.float32)
    x1 = jnp.stack([inputs, inputs], axis=0)              # (2, 6, 3)
    d_in1, d_out1, heads1 = 3, 2, 2

    k1 = jax.random.split(jax.random.PRNGKey(0), 5)
    wq1 = jax.random.uniform(k1[0], (d_in1, d_out1), jnp.float32)
    wk1 = jax.random.uniform(k1[1], (d_in1, d_out1), jnp.float32)
    wv1 = jax.random.uniform(k1[2], (d_in1, d_out1), jnp.float32)
    wo1 = jax.random.uniform(k1[3], (d_out1, d_out1), jnp.float32) - 0.5
    bo1 = jax.random.uniform(k1[4], (1, d_out1), jnp.float32) - 0.5

    out1 = jax.block_until_ready(
        multi_head_attention(x1, wq1, wk1, wv1, wo1, bo1, num_heads=heads1))
    ref1 = multi_head_attention_ref(x1, wq1, wk1, wv1, wo1, bo1, num_heads=heads1)
    assert jnp.allclose(out1, ref1, rtol=2e-2, atol=2e-3), (out1, ref1)

    # --- Config 2: exercises the multi-tile flash path (S > block size, scale != 1) ---
    B2, S2, d_in2, d_out2, heads2 = 2, 160, 16, 8, 2
    k2 = jax.random.split(jax.random.PRNGKey(1), 6)
    x2 = jax.random.normal(k2[0], (B2, S2, d_in2), jnp.float32)
    wq2 = (jax.random.uniform(k2[1], (d_in2, d_out2), jnp.float32) - 0.5)
    wk2 = (jax.random.uniform(k2[2], (d_in2, d_out2), jnp.float32) - 0.5)
    wv2 = (jax.random.uniform(k2[3], (d_in2, d_out2), jnp.float32) - 0.5)
    wo2 = (jax.random.uniform(k2[4], (d_out2, d_out2), jnp.float32) - 0.5)
    bo2 = (jax.random.uniform(k2[5], (1, d_out2), jnp.float32) - 0.5)

    out2 = jax.block_until_ready(
        multi_head_attention(x2, wq2, wk2, wv2, wo2, bo2, num_heads=heads2))
    ref2 = multi_head_attention_ref(x2, wq2, wk2, wv2, wo2, bo2, num_heads=heads2)
    assert jnp.allclose(out2, ref2, rtol=2e-2, atol=2e-3), (
        float(jnp.max(jnp.abs(out2 - ref2))))

    print("KERNEL_OK")
</pallas_src>

<mosaic_0001>
module attributes {stable_mosaic.version = 11 : i64} {
  func.func @_matmul_bias_kernel(%arg0: i32, %arg1: memref<16x3xf32, #tpu.memory_space<vmem>>, %arg2: memref<3x768xf32, #tpu.memory_space<vmem>>, %arg3: memref<1x768xf32, #tpu.memory_space<vmem>>, %arg4: memref<16x768xf32, #tpu.memory_space<vmem>>) attributes {dimension_semantics = [#tpu.dimension_semantics<parallel>], iteration_bounds = array<i64: 1>, scalar_prefetch = 0 : i64, scratch_operands = 0 : i64, tpu.core_type = #tpu.core_type<tc>, window_params = [{transform_indices = @transform_0, window_bounds = array<i64: 16, 3>}, {pipeline_mode = #tpu.pipeline_mode<synchronous>, transform_indices = @transform_1, window_bounds = array<i64: 3, 768>}, {pipeline_mode = #tpu.pipeline_mode<synchronous>, transform_indices = @transform_2, window_bounds = array<i64: 1, 768>}, {transform_indices = @transform_3, window_bounds = array<i64: 16, 768>}]} {
    %c0 = arith.constant 0 : index
    %c0_0 = arith.constant 0 : index
    %0 = vector.load %arg1[%c0, %c0_0] : memref<16x3xf32, #tpu.memory_space<vmem>>, vector<16x3xf32>
    %c0_1 = arith.constant 0 : index
    %c0_2 = arith.constant 0 : index
    %1 = vector.load %arg2[%c0_1, %c0_2] : memref<3x768xf32, #tpu.memory_space<vmem>>, vector<3x768xf32>
    %cst = arith.constant dense<0.000000e+00> : vector<16x768xf32>
    %2 = tpu.matmul %0, %1, %cst {dimension_numbers = #tpu.dot_dimension_numbers<[1], [0], [0], [1], [0, 0, 1, 1], [], []>} : vector<16x3xf32>, vector<3x768xf32>, vector<16x768xf32> -> vector<16x768xf32>
    %c0_3 = arith.constant 0 : index
    %c0_4 = arith.constant 0 : index
    %3 = vector.load %arg3[%c0_3, %c0_4] : memref<1x768xf32, #tpu.memory_space<vmem>>, vector<1x768xf32>
    %4 = vector.broadcast %3 : vector<1x768xf32> to vector<16x768xf32>
    %5 = arith.addf %2, %4 : vector<16x768xf32>
    %c0_5 = arith.constant 0 : index
    %c0_6 = arith.constant 0 : index
    %6 = vector.load %arg4[%c0_5, %c0_6] : memref<16x768xf32, #tpu.memory_space<vmem>>, vector<16x768xf32>
    tpu.vector_store %arg4[%c0_5, %c0_6], %5 {strides = array<i32>} : memref<16x768xf32, #tpu.memory_space<vmem>>, vector<16x768xf32>,
    return
  }
  func.func @transform_0(%arg0: i32) -> (i32, i32) {
    %c0_i32 = arith.constant 0 : i32
    %c0_i32_0 = arith.constant 0 : i32
    return %arg0, %c0_i32 : i32, i32
  }
  func.func @transform_1(%arg0: i32) -> (i32, i32) {
    %c0_i32 = arith.constant 0 : i32
    %c0_i32_0 = arith.constant 0 : i32
    %c0_i32_1 = arith.constant 0 : i32
    return %c0_i32, %c0_i32_0 : i32, i32
  }
  func.func @transform_2(%arg0: i32) -> (i32, i32) {
    %c0_i32 = arith.constant 0 : i32
    %c0_i32_0 = arith.constant 0 : i32
    %c0_i32_1 = arith.constant 0 : i32
    return %c0_i32, %c0_i32_0 : i32, i32
  }
  func.func @transform_3(%arg0: i32) -> (i32, i32) {
    %c0_i32 = arith.constant 0 : i32
    %c0_i32_0 = arith.constant 0 : i32
    return %arg0, %c0_i32 : i32, i32
  }
}

</mosaic_0001>

<bundles_post_ra>
// kernel: tpu_custom_call.1
= control target key start
LH: loop header
LB: loop body
LE: loop exit
PB: predicated region body
PF: predicated region fallthrough
CT: control target
= control target key end

     0   :  { %8 = vsyncpa [#allocation3], 0  ;;  %s386_s0 = inlined_call_operand.vmem [shape: f32[16,3], index: 0, kind: input, shape index: {}]   ;;  %s387_s1 = inlined_call_operand.hbm [shape: f32[3,768], index: 1, kind: input, shape index: {}]   ;;  %s388_s2 = inlined_call_operand.vmem [shape: f32[1,768], index: 2, kind: input, shape index: {}]   ;;  %s389_s3 = inlined_call_operand.hbm [shape: f32[16,768], index: 3, kind: output, shape index: {}]  }
   0x1   :  { %9 = vsyncpa [#allocation4], 0  ;;  %s17_s14 = sshll.u32 %s387_s1, 4  ;;  %s327_s15 = smov [#allocation2]   ;;  %s18_s14 = int_to_ptr.hbm [resolvable:$true] %s17_s14 }
   0x2   :  { %s19_s16 = sshll.u32 %s327_s15, 4  ;;  %s20_s16 = int_to_ptr.vmem [resolvable:$true] %s19_s16 }
   0x3   :  { %22 = dma.hbm_to_vmem [thread:$0]  %s18_s14, 384, %s20_s16, [#allocation3]  }
   0x4   :  { %323 = dma.done.wait [#allocation3], 384  }
   0x5   :  { %324 = vsyncadd [#allocation3], 4294966912  ;;  %v31_v0 = vld [vmem:[#allocation2] sm:$0x77]  ;;  %v32_v1 = vld [vmem:[#allocation2 + $0x8] sm:$0x77] }
   0x6   :  { %51 = vst [vmem:[#allocation1] ss:$2 sm:$0xff] %v31_v0  ;;  %v33_v2 = vld [vmem:[#allocation2 + $0x10] sm:$0x77]  ;;  %vm69_vm0 = vcmask 1042432   ;;  %v30_v3 = vld [vmem:[%s386_s0 + $0x8] sm:$0xff] }
   0x7   :  { %53 = vst [vmem:[#allocation1 + $0x10] ss:$2 sm:$0xff] %v32_v1  ;;  %vm62_vm1 = vcmask 23552   ;;  %v29_v8 = vld [vmem:[%s386_s0] sm:$0xff]  ;;  %s238_s24 = sshll.u32 %s389_s3, 4  ;;  %s329_s25 = smov 768   ;;  %s239_s24 = int_to_ptr.hbm [resolvable:$true] %s238_s24 }
   0x8   :  { %55 = vst [vmem:[#allocation1 + $0x20] ss:$2 sm:$0xff] %v33_v2  ;;  %v34_v11 = vld [vmem:[%s388_s2] sm:$0x3f]  ;;  %s328_s2 = smov [#allocation5]   ;;  %s330_s26 = smov 48  }
   0x9   :  { %v36_v12 = vperm.slane %v34_v11, 0  ;;  %v37_v13 = vperm.slane %v34_v11, 1  ;;  %v40_v22 = vperm.slane %v34_v11, 4  ;;  %v41_v23 = vperm.slane %v34_v11, 5  ;;  %s236_s21 = sshll.u32 %s328_s2, 4  ;;  %s237_s21 = int_to_ptr.vmem [resolvable:$true] %s236_s21 }
   0xa   :  { %v38_v24 = vperm.slane %v34_v11, 2  ;;  %v39_v25 = vperm.slane %v34_v11, 3 }
   0xd   :  { %v56_v4 = vld.sshfl [vmem:[#allocation1] sm:$0xff pattern:$0x75316420]  ;;  %v57_v5 = vld.sshfl [vmem:[#allocation1 + $0x8] sm:$0xff pattern:$0x75316420] }
   0xe   :  { %269 = vmatpush.msk.msra.mxu2 %vm69_vm0, %v56_v4  ;;  %270 = vmatpush.msk.msra.mxu3 %vm69_vm0, %v57_v5  ;;  %v58_v6 = vld.sshfl [vmem:[#allocation1 + $0x10] sm:$0xff pattern:$0x75316420]  ;;  %v59_v7 = vld.sshfl [vmem:[#allocation1 + $0x18] sm:$0xff pattern:$0x75316420] }
   0xf   :  { %253 = vmatmul.msk.f32.vlgmr.msra.gmra.mxu2 %vm62_vm1, %v30_v3  ;;  %256 = vmatmul.msk.f32.vlgmr.msra.gmra.mxu3 %vm62_vm1, %v30_v3  ;;  %v60_v9 = vld.sshfl [vmem:[#allocation1 + $0x20] sm:$0xff pattern:$0x75316420]  ;;  %v61_v10 = vld.sshfl [vmem:[#allocation1 + $0x28] sm:$0xff pattern:$0x75316420] }
  0x10   :  { %257 = vmatpush.msk.msrb.mxu2 %vm69_vm0, %v58_v6  ;;  %260 = vmatpush.msk.msrb.mxu3 %vm69_vm0, %v59_v7 }
  0x11   :  { %251 = vmatpush.msk.msra.mxu0 %vm69_vm0, %v56_v4  ;;  %254 = vmatpush.msk.msra.mxu1 %vm69_vm0, %v57_v5 }
  0x12   :  { %252 = vmatmul.msk.f32.vlgmr.msra.gmra.mxu0 %vm62_vm1, %v29_v8  ;;  %255 = vmatmul.msk.f32.vlgmr.msra.gmra.mxu1 %vm62_vm1, %v29_v8 }
  0x13   :  { %263 = vmatpush.msk.msrb.mxu0 %vm69_vm0, %v60_v9  ;;  %266 = vmatpush.msk.msrb.mxu1 %vm69_vm0, %v61_v10 }
  0x17   :  { %258 = vmatmul.msk.f32.vlgmr.msrb.gmra.mxu2 %vm62_vm1, %v29_v8  ;;  %261 = vmatmul.msk.f32.vlgmr.msrb.gmra.mxu3 %vm62_vm1, %v29_v8 }
  0x1a   :  { %264 = vmatmul.msk.f32.vlgmr.msrb.gmra.mxu0 %vm62_vm1, %v29_v8  ;;  %267 = vmatmul.msk.f32.vlgmr.msrb.gmra.mxu1 %vm62_vm1, %v29_v8 }
  0x1f   :  { %259 = vmatmul.msk.f32.gmra.mxu2 %vm62_vm1, %v30_v3  ;;  %262 = vmatmul.msk.f32.gmra.mxu3 %vm62_vm1, %v30_v3 }
  0x22   :  { %265 = vmatmul.msk.f32.gmra.mxu0 %vm62_vm1, %v30_v3  ;;  %268 = vmatmul.msk.f32.gmra.mxu1 %vm62_vm1, %v30_v3 }
  0x8f   :  { %v99_v14 = vpop.f32.mrf.mxu0  ;;  %v122_v15 = vpop.f32.mrf.mxu1 }
  0x90   :  { %v100_v16 = vadd.f32 %v99_v14, %v36_v12  ;;  %v123_v17 = vadd.f32 %v122_v15, %v37_v13 }
  0x92   :  { %220 = vst [vmem:[#allocation5] sm:$0xff] %v100_v16  ;;  %v102_v18 = vpop.f32.mrf.mxu2  ;;  %v125_v19 = vpop.f32.mrf.mxu3 }
  0x93   :  { %v103_v20 = vadd.f32 %v102_v18, %v36_v12  ;;  %221 = vst [vmem:[#allocation5 + $0x8] sm:$0xff] %v123_v17  ;;  %v126_v21 = vadd.f32 %v125_v19, %v37_v13 }
  0x95   :  { %226 = vst [vmem:[#allocation5 + $0x30] sm:$0xff] %v103_v20 }
  0x96   :  { %227 = vst [vmem:[#allocation5 + $0x38] sm:$0xff] %v126_v21 }
  0x97   :  { %v191_v26 = vpop.f32.mrf.mxu0  ;;  %v214_v27 = vpop.f32.mrf.mxu1 }
  0x98   :  { %v192_v28 = vadd.f32 %v191_v26, %v40_v22  ;;  %v215_v29 = vadd.f32 %v214_v27, %v41_v23 }
  0x9a   :  { %v145_v30 = vpop.f32.mrf.mxu2  ;;  %v168_v31 = vpop.f32.mrf.mxu3  ;;  %224 = vst [vmem:[#allocation5 + $0x20] sm:$0xff] %v192_v28 }
  0x9b   :  { %v146_v32 = vadd.f32 %v145_v30, %v38_v24  ;;  %v169_v33 = vadd.f32 %v168_v31, %v39_v25  ;;  %225 = vst [vmem:[#allocation5 + $0x28] sm:$0xff] %v215_v29 }
  0x9d   :  { %222 = vst [vmem:[#allocation5 + $0x10] sm:$0xff] %v146_v32 }
  0x9e   :  { %223 = vst [vmem:[#allocation5 + $0x18] sm:$0xff] %v169_v33 }
  0x9f   :  { %v194_v34 = vpop.f32.mrf.mxu0  ;;  %v217_v35 = vpop.f32.mrf.mxu1 }
  0xa0   :  { %v195_v36 = vadd.f32 %v194_v34, %v40_v22  ;;  %v218_v37 = vadd.f32 %v217_v35, %v41_v23 }
  0xa2   :  { %v148_v38 = vpop.f32.mrf.mxu2  ;;  %v171_v39 = vpop.f32.mrf.mxu3  ;;  %230 = vst [vmem:[#allocation5 + $0x50] sm:$0xff] %v195_v36 }
  0xa3   :  { %v149_v40 = vadd.f32 %v148_v38, %v38_v24  ;;  %v172_v41 = vadd.f32 %v171_v39, %v39_v25  ;;  %231 = vst [vmem:[#allocation5 + $0x58] sm:$0xff] %v218_v37 }
  0xa5   :  { %228 = vst [vmem:[#allocation5 + $0x40] sm:$0xff] %v149_v40 }
  0xa6   :  { %229 = vst [vmem:[#allocation5 + $0x48] sm:$0xff] %v172_v41 }
  0xa7   :  { %244 = dma.vmem_to_hbm [thread:$0]  %s237_s21, 1536, %s239_s24, [#allocation4], %s329_s25, %s329_s25, %s330_s26  }
  0xa8   :  { %325 = dma.done.wait [#allocation4], 1536  }
  0xa9   :  { %326 = vsyncadd [#allocation4], 4294965760 }
  0xaa   :  { %249 = vsyncpa [#allocation3], 1 }
  0xab   :  { %250 = vsyncpa [#allocation4], 1 }

</bundles_post_ra>
